<compile_context>
chip_gen: v7x
topology: tpu7x:2x2x1
jax: 0.10.0
libtpu: 0.0.40
codegen_flags: <defaults>
</compile_context>

<pallas_src>
import functools

import jax
import jax.numpy as jnp
from jax import lax
from jax.experimental import pallas as pl
from jax.experimental.pallas import tpu as pltpu

LANE = 128       # TPU lane width; hidden and fused-head widths are padded to this.
MAX_TILE = 2048  # Upper bound on batch-tile rows (VMEM-friendly on every generation).


def _round_up(x, m):
    return ((x + m - 1) // m) * m


def _choose_tile(batch, max_tile=MAX_TILE):
    """Pick the batch tile: as large as possible, but always targeting >=2 grid steps
    (even count for large batches) so both v7x TensorCores get sharded work."""
    n_steps = max(2, -(-batch // max_tile))
    n_steps += n_steps % 2                      # even number of steps for the 2-TC split
    tb = _round_up(-(-batch // n_steps), 8)     # sublane-aligned
    return max(8, min(tb, _round_up(batch, 8)))


def _sac_actor_kernel(obs_ref, w1_ref, b1_ref, w2_ref, b2_ref, wh_ref, bh_ref,
                      out_ref, *, act_dim):
    """Fused actor MLP forward for one batch tile.

    obs_ref : (TB, obs_dim) f32               native-width observation tile
    w1, b1  : (obs_dim, H_PAD) f32 / (1, H_PAD) f32   Linear 1 (+ReLU), hidden padded to 128
    w2, b2  : (H_PAD, H_PAD) bf16 / (1, H_PAD) f32    Linear 2 (+ReLU)
    wh, bh  : (H_PAD, LANE) bf16 / (1, LANE) f32      fused heads: [0:A)=mean, [A:2A)=log_std
    out_ref : (TB, LANE) f32                   cols [0:A)=mean, [A:2A)=std, rest padding
    """
    x = obs_ref[...]

    # Layer 1: f32 matmul (tiny K = obs_dim; keeps full observation precision).
    h1 = jnp.dot(x, w1_ref[...], preferred_element_type=jnp.float32) + b1_ref[...]
    h1 = jnp.maximum(h1, 0.0).astype(jnp.bfloat16)

    # Layer 2: bf16 MXU inputs, f32 accumulation.
    h2 = jnp.dot(h1, w2_ref[...], preferred_element_type=jnp.float32) + b2_ref[...]
    h2 = jnp.maximum(h2, 0.0).astype(jnp.bfloat16)

    # Fused heads: one matmul produces mean and log_std side by side (lane-dense).
    heads = jnp.dot(h2, wh_ref[...], preferred_element_type=jnp.float32) + bh_ref[...]

    # std = exp(log_std) on the log_std lanes only (EUP slot); (1, LANE) mask row
    # broadcasts across the batch tile instead of materializing a (TB, 128) iota.
    lane = lax.broadcasted_iota(jnp.int32, (1, heads.shape[1]), 1)
    is_std = (lane >= act_dim) & (lane < 2 * act_dim)
    out_ref[...] = jnp.where(is_std, jnp.exp(heads), heads).astype(out_ref.dtype)


def pad_params(params, obs_dim, hidden, act_dim):
    """Zero-pad weights to lane-dense shapes, fuse the two heads into one matrix, and
    store the two 128x128 matrices in bf16 (halves the dominant weight DMA)."""
    assert 2 * act_dim <= LANE, "fused head assumes 2*act_dim <= 128"
    h_pad = _round_up(hidden, LANE)
    f32, bf16 = jnp.float32, jnp.bfloat16

    w1 = jnp.zeros((obs_dim, h_pad), f32).at[:, :hidden].set(params["w1"])
    b1 = jnp.zeros((1, h_pad), f32).at[0, :hidden].set(params["b1"])
    w2 = jnp.zeros((h_pad, h_pad), bf16).at[:hidden, :hidden].set(
        params["w2"].astype(bf16))
    b2 = jnp.zeros((1, h_pad), f32).at[0, :hidden].set(params["b2"])
    wh = (jnp.zeros((h_pad, LANE), bf16)
          .at[:hidden, :act_dim].set(params["w_mean"].astype(bf16))
          .at[:hidden, act_dim:2 * act_dim].set(params["w_log_std"].astype(bf16)))
    bh = (jnp.zeros((1, LANE), f32)
          .at[0, :act_dim].set(params["b_mean"])
          .at[0, act_dim:2 * act_dim].set(params["b_log_std"]))
    return dict(w1=w1, b1=b1, w2=w2, b2=b2, wh=wh, bh=bh)


def sac_actor_forward_fused(obs, padded, *, act_dim):
    """SACActor.forward (continuous branch), fused output.

    Returns a lane-dense (B, 128) block: cols [0:act_dim) = mean,
    [act_dim:2*act_dim) = std, remaining lanes are padding.  Downstream SAC math
    should consume this block directly to avoid narrow masked stores.
    """
    obs = obs.astype(jnp.float32)
    B, obs_dim = obs.shape
    h_pad = padded["w1"].shape[1]

    tb = _choose_tile(B)
    grid = (pl.cdiv(B, tb),)   # Pallas clips the ragged trailing block (no jnp.pad copy)

    flops = 2 * B * (obs_dim * h_pad + h_pad * h_pad + h_pad * LANE)
    bytes_accessed = int(
        obs.size * 4
        + sum(int(v.size) * v.dtype.itemsize for v in padded.values())
        + B * LANE * 4)
    cost = pl.CostEstimate(flops=flops, transcendentals=B * LANE,
                           bytes_accessed=bytes_accessed)

    kernel = functools.partial(_sac_actor_kernel, act_dim=act_dim)
    return pl.pallas_call(
        kernel,
        out_shape=jax.ShapeDtypeStruct((B, LANE), jnp.float32),
        grid=grid,
        in_specs=[
            pl.BlockSpec((tb, obs_dim), lambda i: (i, 0)),      # obs tile (native width)
            pl.BlockSpec((obs_dim, h_pad), lambda i: (0, 0)),   # w1 (VMEM-resident)
            pl.BlockSpec((1, h_pad), lambda i: (0, 0)),         # b1
            pl.BlockSpec((h_pad, h_pad), lambda i: (0, 0)),     # w2 (bf16)
            pl.BlockSpec((1, h_pad), lambda i: (0, 0)),         # b2
            pl.BlockSpec((h_pad, LANE), lambda i: (0, 0)),      # fused heads W (bf16)
            pl.BlockSpec((1, LANE), lambda i: (0, 0)),          # fused heads b
        ],
        out_specs=pl.BlockSpec((tb, LANE), lambda i: (i, 0)),
        compiler_params=pltpu.CompilerParams(
            dimension_semantics=("parallel",),
            vmem_limit_bytes=32 * 1024 * 1024),   # covers v5e's 16 MiB default limit
        cost_estimate=cost,
    )(obs, padded["w1"], padded["b1"], padded["w2"], padded["b2"],
      padded["wh"], padded["bh"])


def split_mean_std(fused, act_dim):
    """Slice the fused (B, 128) block into (mean, std).  Only for consumers that
    truly need separate narrow tensors (e.g. the self-test below)."""
    return fused[:, :act_dim], fused[:, act_dim:2 * act_dim]


def sac_actor_forward(obs, padded, *, act_dim):
    """Convenience wrapper matching the module's forward: returns (mean, std)."""
    return split_mean_std(sac_actor_forward_fused(obs, padded, act_dim=act_dim), act_dim)


def init_params(key, obs_dim, hidden, act_dim):
    """Deterministic parameter init (nn.Linear default-style), unpadded layout."""
    ks = jax.random.split(key, 8)

    def lin(kw, kb, fan_in, fan_out):
        bound = 1.0 / jnp.sqrt(jnp.float32(fan_in))
        w = jax.random.uniform(kw, (fan_in, fan_out), jnp.float32, -bound, bound)
        b = jax.random.uniform(kb, (fan_out,), jnp.float32, -bound, bound)
        return w, b

    w1, b1 = lin(ks[0], ks[1], obs_dim, hidden)
    w2, b2 = lin(ks[2], ks[3], hidden, hidden)
    wm, bm = lin(ks[4], ks[5], hidden, act_dim)
    ws, bs = lin(ks[6], ks[7], hidden, act_dim)
    return dict(w1=w1, b1=b1, w2=w2, b2=b2,
                w_mean=wm, b_mean=bm, w_log_std=ws, b_log_std=bs)


def reference_forward(obs, params):
    """Pure-JAX f32 reference of SACActor.forward (continuous): (mean, std)."""
    x = obs.astype(jnp.float32)
    h1 = jnp.maximum(x @ params["w1"] + params["b1"], 0.0)
    h2 = jnp.maximum(h1 @ params["w2"] + params["b2"], 0.0)
    mean = h2 @ params["w_mean"] + params["b_mean"]
    std = jnp.exp(h2 @ params["w_log_std"] + params["b_log_std"])
    return mean, std


if __name__ == "__main__":
    # Small shapes consistent with the module: Box action space,
    # obs_dim=12, act_dim=4, act_hidden_size=[32, 32].
    B, OBS_DIM, ACT_DIM, HIDDEN = 8, 12, 4, 32

    key = jax.random.PRNGKey(0)
    k_obs, k_params = jax.random.split(key, 2)

    obs = jax.random.normal(k_obs, (B, OBS_DIM), jnp.float32)
    params = init_params(k_params, OBS_DIM, HIDDEN, ACT_DIM)
    padded = pad_params(params, OBS_DIM, HIDDEN, ACT_DIM)

    fused = sac_actor_forward_fused(obs, padded, act_dim=ACT_DIM)
    fused = jax.block_until_ready(fused)
    mean, std = split_mean_std(fused, ACT_DIM)

    ref_mean, ref_std = reference_forward(obs, params)
    assert fused.shape == (B, LANE), fused.shape
    assert mean.shape == (B, ACT_DIM), mean.shape
    assert std.shape == (B, ACT_DIM), std.shape
    # bf16 weights in the 128x128 layers => loosened tolerance vs the f32 reference.
    assert jnp.allclose(mean, ref_mean, atol=2e-2, rtol=2e-2), (mean, ref_mean)
    assert jnp.allclose(std, ref_std, atol=2e-2, rtol=2e-2), (std, ref_std)

    print("KERNEL_OK")
</pallas_src>

<mosaic_0001>
module attributes {stable_mosaic.version = 11 : i64} {
  func.func @_sac_actor_kernel(%arg0: i32, %arg1: memref<8x12xf32, #tpu.memory_space<vmem>>, %arg2: memref<12x128xf32, #tpu.memory_space<vmem>>, %arg3: memref<1x128xf32, #tpu.memory_space<vmem>>, %arg4: memref<128x128xbf16, #tpu.memory_space<vmem>>, %arg5: memref<1x128xf32, #tpu.memory_space<vmem>>, %arg6: memref<128x128xbf16, #tpu.memory_space<vmem>>, %arg7: memref<1x128xf32, #tpu.memory_space<vmem>>, %arg8: memref<8x128xf32, #tpu.memory_space<vmem>>) attributes {dimension_semantics = [#tpu.dimension_semantics<parallel>], iteration_bounds = array<i64: 1>, scalar_prefetch = 0 : i64, scratch_operands = 0 : i64, tpu.core_type = #tpu.core_type<tc>, window_params = [{transform_indices = @transform_0, window_bounds = array<i64: 8, 12>}, {pipeline_mode = #tpu.pipeline_mode<synchronous>, transform_indices = @transform_1, window_bounds = array<i64: 12, 128>}, {pipeline_mode = #tpu.pipeline_mode<synchronous>, transform_indices = @transform_2, window_bounds = array<i64: 1, 128>}, {pipeline_mode = #tpu.pipeline_mode<synchronous>, transform_indices = @transform_3, window_bounds = array<i64: 128, 128>}, {pipeline_mode = #tpu.pipeline_mode<synchronous>, transform_indices = @transform_4, window_bounds = array<i64: 1, 128>}, {pipeline_mode = #tpu.pipeline_mode<synchronous>, transform_indices = @transform_5, window_bounds = array<i64: 128, 128>}, {pipeline_mode = #tpu.pipeline_mode<synchronous>, transform_indices = @transform_6, window_bounds = array<i64: 1, 128>}, {transform_indices = @transform_7, window_bounds = array<i64: 8, 128>}]} {
    %c0 = arith.constant 0 : index
    %c0_0 = arith.constant 0 : index
    %0 = vector.load %arg1[%c0, %c0_0] : memref<8x12xf32, #tpu.memory_space<vmem>>, vector<8x12xf32>
    %c0_1 = arith.constant 0 : index
    %c0_2 = arith.constant 0 : index
    %1 = vector.load %arg2[%c0_1, %c0_2] : memref<12x128xf32, #tpu.memory_space<vmem>>, vector<12x128xf32>
    %cst = arith.constant dense<0.000000e+00> : vector<8x128xf32>
    %2 = tpu.matmul %0, %1, %cst {dimension_numbers = #tpu.dot_dimension_numbers<[1], [0], [0], [1], [0, 0, 1, 1], [], []>} : vector<8x12xf32>, vector<12x128xf32>, vector<8x128xf32> -> vector<8x128xf32>
    %c0_3 = arith.constant 0 : index
    %c0_4 = arith.constant 0 : index
    %3 = vector.load %arg3[%c0_3, %c0_4] : memref<1x128xf32, #tpu.memory_space<vmem>>, vector<1x128xf32>
    %4 = vector.broadcast %3 : vector<1x128xf32> to vector<8x128xf32>
    %5 = arith.addf %2, %4 : vector<8x128xf32>
    %cst_5 = arith.constant 0.000000e+00 : f32
    %6 = vector.broadcast %cst_5 : f32 to vector<8x128xf32>
    %7 = arith.maximumf %5, %6 : vector<8x128xf32>
    %8 = arith.truncf %7 : vector<8x128xf32> to vector<8x128xbf16>
    %c0_6 = arith.constant 0 : index
    %c0_7 = arith.constant 0 : index
    %9 = vector.load %arg4[%c0_6, %c0_7] : memref<128x128xbf16, #tpu.memory_space<vmem>>, vector<128x128xbf16>
    %cst_8 = arith.constant dense<0.000000e+00> : vector<8x128xf32>
    %10 = tpu.matmul %8, %9, %cst_8 {dimension_numbers = #tpu.dot_dimension_numbers<[1], [0], [0], [1], [0, 0, 1, 1], [], []>} : vector<8x128xbf16>, vector<128x128xbf16>, vector<8x128xf32> -> vector<8x128xf32>
    %c0_9 = arith.constant 0 : index
    %c0_10 = arith.constant 0 : index
    %11 = vector.load %arg5[%c0_9, %c0_10] : memref<1x128xf32, #tpu.memory_space<vmem>>, vector<1x128xf32>
    %12 = vector.broadcast %11 : vector<1x128xf32> to vector<8x128xf32>
    %13 = arith.addf %10, %12 : vector<8x128xf32>
    %cst_11 = arith.constant 0.000000e+00 : f32
    %14 = vector.broadcast %cst_11 : f32 to vector<8x128xf32>
    %15 = arith.maximumf %13, %14 : vector<8x128xf32>
    %16 = arith.truncf %15 : vector<8x128xf32> to vector<8x128xbf16>
    %c0_12 = arith.constant 0 : index
    %c0_13 = arith.constant 0 : index
    %17 = vector.load %arg6[%c0_12, %c0_13] : memref<128x128xbf16, #tpu.memory_space<vmem>>, vector<128x128xbf16>
    %cst_14 = arith.constant dense<0.000000e+00> : vector<8x128xf32>
    %18 = tpu.matmul %16, %17, %cst_14 {dimension_numbers = #tpu.dot_dimension_numbers<[1], [0], [0], [1], [0, 0, 1, 1], [], []>} : vector<8x128xbf16>, vector<128x128xbf16>, vector<8x128xf32> -> vector<8x128xf32>
    %c0_15 = arith.constant 0 : index
    %c0_16 = arith.constant 0 : index
    %19 = vector.load %arg7[%c0_15, %c0_16] : memref<1x128xf32, #tpu.memory_space<vmem>>, vector<1x128xf32>
    %20 = vector.broadcast %19 : vector<1x128xf32> to vector<8x128xf32>
    %21 = arith.addf %18, %20 : vector<8x128xf32>
    %22 = tpu.iota {dimensions = array<i32: 1>} : vector<1x128xi32>
    %c4_i32 = arith.constant 4 : i32
    %23 = vector.broadcast %c4_i32 : i32 to vector<1x128xi32>
    %24 = arith.cmpi sge, %22, %23 : vector<1x128xi32>
    %c8_i32 = arith.constant 8 : i32
    %25 = vector.broadcast %c8_i32 : i32 to vector<1x128xi32>
    %26 = arith.cmpi slt, %22, %25 : vector<1x128xi32>
    %27 = arith.andi %24, %26 : vector<1x128xi1>
    %28 = math.exp %21 : vector<8x128xf32>
    %29 = vector.shape_cast %27 : vector<1x128xi1> to vector<1x128xi1>
    %30 = vector.broadcast %29 : vector<1x128xi1> to vector<8x128xi1>
    %31 = arith.select %30, %28, %21 : vector<8x128xi1>, vector<8x128xf32>
    %c0_17 = arith.constant 0 : index
    %c0_18 = arith.constant 0 : index
    %32 = vector.load %arg8[%c0_17, %c0_18] : memref<8x128xf32, #tpu.memory_space<vmem>>, vector<8x128xf32>
    tpu.vector_store %arg8[%c0_17, %c0_18], %31 {strides = array<i32>} : memref<8x128xf32, #tpu.memory_space<vmem>>, vector<8x128xf32>,
    return
  }
  func.func @transform_0(%arg0: i32) -> (i32, i32) {
    %c0_i32 = arith.constant 0 : i32
    %c0_i32_0 = arith.constant 0 : i32
    return %arg0, %c0_i32 : i32, i32
  }
  func.func @transform_1(%arg0: i32) -> (i32, i32) {
    %c0_i32 = arith.constant 0 : i32
    %c0_i32_0 = arith.constant 0 : i32
    %c0_i32_1 = arith.constant 0 : i32
    return %c0_i32, %c0_i32_0 : i32, i32
  }
  func.func @transform_2(%arg0: i32) -> (i32, i32) {
    %c0_i32 = arith.constant 0 : i32
    %c0_i32_0 = arith.constant 0 : i32
    %c0_i32_1 = arith.constant 0 : i32
    return %c0_i32, %c0_i32_0 : i32, i32
  }
  func.func @transform_3(%arg0: i32) -> (i32, i32) {
    %c0_i32 = arith.constant 0 : i32
    %c0_i32_0 = arith.constant 0 : i32
    %c0_i32_1 = arith.constant 0 : i32
    return %c0_i32, %c0_i32_0 : i32, i32
  }
  func.func @transform_4(%arg0: i32) -> (i32, i32) {
    %c0_i32 = arith.constant 0 : i32
    %c0_i32_0 = arith.constant 0 : i32
    %c0_i32_1 = arith.constant 0 : i32
    return %c0_i32, %c0_i32_0 : i32, i32
  }
  func.func @transform_5(%arg0: i32) -> (i32, i32) {
    %c0_i32 = arith.constant 0 : i32
    %c0_i32_0 = arith.constant 0 : i32
    %c0_i32_1 = arith.constant 0 : i32
    return %c0_i32, %c0_i32_0 : i32, i32
  }
  func.func @transform_6(%arg0: i32) -> (i32, i32) {
    %c0_i32 = arith.constant 0 : i32
    %c0_i32_0 = arith.constant 0 : i32
    %c0_i32_1 = arith.constant 0 : i32
    return %c0_i32, %c0_i32_0 : i32, i32
  }
  func.func @transform_7(%arg0: i32) -> (i32, i32) {
    %c0_i32 = arith.constant 0 : i32
    %c0_i32_0 = arith.constant 0 : i32
    return %arg0, %c0_i32 : i32, i32
  }
}

</mosaic_0001>

<bundles_post_ra>
// kernel: tpu_custom_call.1
= control target key start
LH: loop header
LB: loop body
LE: loop exit
PB: predicated region body
PF: predicated region fallthrough
CT: control target
= control target key end

     0   :  { %12 = vsyncpa [#allocation3], 0  ;;  %s809_s0 = inlined_call_operand.hbm [shape: f32[8,12], index: 0, kind: input, shape index: {}]   ;;  %s810_s1 = inlined_call_operand.hbm [shape: f32[12,128], index: 1, kind: input, shape index: {}]   ;;  %s811_s2 = inlined_call_operand.vmem [shape: f32[1,128], index: 2, kind: input, shape index: {}]   ;;  %s812_s3 = inlined_call_operand.hbm [shape: bf16[128,128], index: 3, kind: input, shape index: {}]   ;;  %s813_s4 = inlined_call_operand.vmem [shape: f32[1,128], index: 4, kind: input, shape index: {}]   ;;  %s814_s5 = inlined_call_operand.hbm [shape: bf16[128,128], index: 5, kind: input, shape index: {}]   ;;  %s815_s6 = inlined_call_operand.vmem [shape: f32[1,128], index: 6, kind: input, shape index: {}]   ;;  %s816_s7 = inlined_call_operand.hbm [shape: f32[8,128], index: 7, kind: output, shape index: {}]  }
   0x1   :  { %13 = vsyncpa [#allocation6], 0 }
   0x2   :  { %14 = vsyncpa [#allocation9], 0 }
   0x3   :  { %15 = vsyncpa [#allocation4], 0  ;;  %s665_s24 = smov [#allocation5]   ;;  %s547_s28 = scalar_lea.hbm %s810_s1, 256 }
   0x4   :  { %s31_s25 = sshll.u32 %s665_s24, 4  ;;  %p548_p0 = scmp.ne.s32.totalorder %s810_s1, %s547_s28  ;;  %s32_s25 = int_to_ptr.vmem [resolvable:$true] %s31_s25 }
   0x5   :  { %p551_p1 = scmp.lt.u32.totalorder %s547_s28, %s810_s1 }
   0x7   :  { %p553_p2 = pnand %p551_p1, %p548_p0 }
   0x9   :  { %556 = shalt.err (!%p553_p2)
}
   0xa   :  { %s557_s10 = scalar_lea.vmem %s32_s25, 256  ;;  %p562_p4 = scmp.lt.s32.totalorder %s32_s25, %s32_s25 }
   0xb   :  { %p558_p3 = scmp.ne.s32.totalorder %s32_s25, %s557_s10  ;;  %p563_p5 = scmp.lt.s32.totalorder %s557_s10, %s557_s10 }
   0xd   :  { %p564_p6 = por %p563_p5, %p562_p4 }
   0xf   :  { %p565_p7 = pnand %p564_p6, %p558_p3 }
  0x11   :  { %568 = shalt.err (!%p565_p7)
}
  0x12   :  { %s666_s11 = smov 128   ;;  %s667_s12 = smov 8  }
  0x13   :  { %37 = dma.hbm_to_vmem [thread:$0]  %s810_s1, 256, %s32_s25, [#allocation6], %s666_s11, %s666_s11, %s667_s12  }
  0x14   :  { %s668_s15 = smov [#allocation2]   ;;  %s669_s17 = smov [#allocation7]  }
  0x15   :  { %s22_s16 = sshll.u32 %s668_s15, 4  ;;  %s45_s18 = sshll.u32 %s669_s17, 4  ;;  %s23_s16 = int_to_ptr.vmem [resolvable:$true] %s22_s16  ;;  %s46_s18 = int_to_ptr.vmem [resolvable:$true] %s45_s18 }
  0x16   :  { %s569_s21 = scalar_lea.hbm %s809_s0, 128 }
  0x17   :  { %p570_p8 = scmp.ne.s32.totalorder %s809_s0, %s569_s21  ;;  %p573_p9 = scmp.lt.u32.totalorder %s569_s21, %s809_s0 }
  0x19   :  { %p575_p10 = pnand %p573_p9, %p570_p8 }
  0x1b   :  { %578 = shalt.err (!%p575_p10)
}
  0x1c   :  { %s579_s1 = scalar_lea.vmem %s23_s16, 128  ;;  %p584_p12 = scmp.lt.s32.totalorder %s23_s16, %s23_s16 }
  0x1d   :  { %p580_p11 = scmp.ne.s32.totalorder %s23_s16, %s579_s1  ;;  %p585_p13 = scmp.lt.s32.totalorder %s579_s1, %s579_s1 }
  0x1f   :  { %p586_p0 = por %p585_p13, %p584_p12 }
  0x21   :  { %p587_p1 = pnand %p586_p0, %p580_p11 }
  0x23   :  { %590 = shalt.err (!%p587_p1)
}
  0x24   :  { %25 = dma.hbm_to_vmem [thread:$0]  %s809_s0, 128, %s23_s16, [#allocation3]  }
  0x25   :  { %s591_s30 = scalar_lea.hbm %s812_s3, 1024 }
  0x26   :  { %p592_p2 = scmp.ne.s32.totalorder %s812_s3, %s591_s30  ;;  %p595_p3 = scmp.lt.u32.totalorder %s591_s30, %s812_s3 }
  0x28   :  { %p597_p4 = pnand %p595_p3, %p592_p2 }
  0x2a   :  { %600 = shalt.err (!%p597_p4)
}
  0x2b   :  { %s601_s12 = scalar_lea.vmem %s46_s18, 1024  ;;  %p606_p6 = scmp.lt.s32.totalorder %s46_s18, %s46_s18 }
  0x2c   :  { %p602_p5 = scmp.ne.s32.totalorder %s46_s18, %s601_s12  ;;  %p607_p7 = scmp.lt.s32.totalorder %s601_s12, %s601_s12 }
  0x2e   :  { %p608_p8 = por %p607_p7, %p606_p6 }
  0x30   :  { %p609_p9 = pnand %p608_p8, %p602_p5 }
  0x32   :  { %612 = shalt.err (!%p609_p9)
}
  0x33   :  { %s670_s0 = smov 64   ;;  %s671_s13 = smov 4  }
  0x34   :  { %51 = dma.hbm_to_vmem [thread:$0]  %s812_s3, 1024, %s46_s18, [#allocation6], %s670_s0, %s670_s0, %s671_s13  }
  0x35   :  { %s672_s16 = smov [#allocation8]   ;;  %s613_s21 = scalar_lea.hbm %s814_s5, 1024 }
  0x36   :  { %s59_s17 = sshll.u32 %s672_s16, 4  ;;  %p614_p10 = scmp.ne.s32.totalorder %s814_s5, %s613_s21  ;;  %s60_s17 = int_to_ptr.vmem [resolvable:$true] %s59_s17 }
  0x37   :  { %p617_p11 = scmp.lt.u32.totalorder %s613_s21, %s814_s5 }
  0x39   :  { %p619_p12 = pnand %p617_p11, %p614_p10 }
  0x3b   :  { %622 = shalt.err (!%p619_p12)
}
  0x3c   :  { %s623_s1 = scalar_lea.vmem %s60_s17, 1024  ;;  %p628_p0 = scmp.lt.s32.totalorder %s60_s17, %s60_s17 }
  0x3d   :  { %p624_p13 = scmp.ne.s32.totalorder %s60_s17, %s623_s1  ;;  %p629_p1 = scmp.lt.s32.totalorder %s623_s1, %s623_s1 }
  0x3f   :  { %p630_p2 = por %p629_p1, %p628_p0 }
  0x41   :  { %p631_p3 = pnand %p630_p2, %p624_p13 }
  0x43   :  { %634 = shalt.err (!%p631_p3)
}
  0x44   :  { %65 = dma.hbm_to_vmem [thread:$0]  %s814_s5, 1024, %s60_s17, [#allocation9], %s670_s0, %s670_s0, %s671_s13  }
  0x45   :  { %657 = dma.done.wait [#allocation3], 128  }
  0x46   :  { %658 = vsyncadd [#allocation3], 4294967168 }
  0x47   :  { %659 = dma.done.wait [#allocation6], 1280  }
  0x48   :  { %660 = vsyncadd [#allocation6], 4294966016 }
  0x49   :  { %661 = dma.done.wait [#allocation9], 1024  }
  0x4a   :  { %662 = vsyncadd [#allocation9], 4294966272  ;;  %v673_v0 = vmov 0.0|0.0   ;;  %vm674_vm0 = vmmov 0   ;;  %v675_v1 = vmov 0.0   ;;  %vm95_vm1 = vcmask 1043456  }
  0x4b   :  { %512 = vmatprep.subr.bf16.mxu0 %v673_v0  ;;  %469 = vmatprep.mubr.msk.f32.mxu0 %vm674_vm0, %v675_v1  ;;  %v82_v2 = vld [vmem:[#allocation5] sm:$0xff]  ;;  %v83_v3 = vld [vmem:[#allocation5 + $0x8] sm:$0xf]  ;;  %vm676_vm2 = vmmov 1   ;;  %v529_v5 = vld [vmem:[#allocation7] sm:$0xff]   ;;  %vm91_vm4 = vcmask 97280   ;;  %v395_v41 = vlaneseq }
  0x4c   :  { %472 = vmatprep.subr.bf16.mxu1 %v675_v1  ;;  %488 = vmatprep.mubr.msk.bf16.mxu1 %vm674_vm0, %v675_v1  ;;  %vm514_vm3 = vmpackc.low %vm95_vm1, %vm676_vm2  ;;  %v513_v4 = vpack.c.bf16 %v83_v3, %v82_v2  ;;  %v81_v6 = vld [vmem:[#allocation2] sm:$0xff]  ;;  %v531_v8 = vld [vmem:[#allocation7 + $0x10] sm:$0xff]  }
  0x4d   :  { %473 = vmatpush3.bf16.msra.mxu1 %v529_v5  ;;  %v530_v7 = vld [vmem:[#allocation7 + $0x8] sm:$0xff]   ;;  %v532_v9 = vld [vmem:[#allocation7 + $0x18] sm:$0xff]   ;;  %v533_v10 = vld [vmem:[#allocation7 + $0x20] sm:$0xff]   ;;  %v396_v44 = vand.u32 127, %v395_v41 }
  0x4e   :  { %515 = vmatpush3.bf16.msk.msra.mxu0 %vm514_vm3, %v513_v4  ;;  %474 = vmatprep.subr.bf16.mxu1 %v675_v1  ;;  %v534_v11 = vld [vmem:[#allocation7 + $0x28] sm:$0xff]   ;;  %v535_v12 = vld [vmem:[#allocation7 + $0x30] sm:$0xff]   ;;  %v536_v13 = vld [vmem:[#allocation7 + $0x38] sm:$0xff]  }
  0x4f   :  { %492 = vmatprep.subr.bf16.mxu0 %v675_v1  ;;  %v537_v14 = vld [vmem:[#allocation8] sm:$0xff]   ;;  %v538_v15 = vld [vmem:[#allocation8 + $0x8] sm:$0xff]   ;;  %v539_v16 = vld [vmem:[#allocation8 + $0x10] sm:$0xff]   ;;  %vm397_vm5 = vcmp.ge.s32.totalorder %v396_v44, 4  ;;  %vm398_vm6 = vcmp.lt.s32.totalorder %v396_v44, 8 }
  0x50   :  { %v540_v17 = vld [vmem:[#allocation8 + $0x18] sm:$0xff]   ;;  %v541_v18 = vld [vmem:[#allocation8 + $0x20] sm:$0xff]   ;;  %v542_v19 = vld [vmem:[#allocation8 + $0x28] sm:$0xff]  }
  0x51   :  { %470 = vmatmul.mubr.msk.f32.vlgmr.msra.gmra.mrb[0].mxu0 %vm91_vm4, %v81_v6  ;;  %475 = vmatpush3.bf16.msra.mxu1 %v530_v7  ;;  %v423_v20 = vld [vmem:[%s811_s2] ss:$0 sm:$0xff]  ;;  %v543_v26 = vld [vmem:[#allocation8 + $0x30] sm:$0xff]   ;;  %v544_v27 = vld [vmem:[#allocation8 + $0x38] sm:$0xff]  }
  0x52   :  { %508 = vmatprep.mubr.msk.bf16.mxu0 %vm674_vm0, %v675_v1  ;;  %476 = vmatprep.subr.bf16.mxu1 %v675_v1  ;;  %v426_v28 = vld [vmem:[%s813_s4] ss:$0 sm:$0xff]  ;;  %s677_s4 = smov [#allocation10]   ;;  %vm399_vm7 = vmand %vm397_vm5, %vm398_vm6 }
  0x53   :  { %493 = vmatpush3.bf16.msra.mxu0 %v537_v14  ;;  %v435_v36 = vld [vmem:[%s815_s6] ss:$0 sm:$0xff]  ;;  %s412_s30 = sshll.u32 %s677_s4, 4  ;;  %s413_s30 = int_to_ptr.vmem [resolvable:$true] %s412_s30 }
  0x54   :  { %494 = vmatprep.subr.bf16.mxu0 %v675_v1  ;;  %s635_s8 = scalar_lea.vmem %s413_s30, 128  ;;  %p640_p5 = scmp.lt.s32.totalorder %s413_s30, %s413_s30 }
  0x55   :  { %477 = vmatpush3.bf16.msra.mxu1 %v531_v8  ;;  %p636_p4 = scmp.ne.s32.totalorder %s413_s30, %s635_s8  ;;  %p641_p6 = scmp.lt.s32.totalorder %s635_s8, %s635_s8 }
  0x56   :  { %478 = vmatprep.subr.bf16.mxu1 %v675_v1 }
  0x57   :  { %495 = vmatpush3.bf16.msra.mxu0 %v538_v15  ;;  %p642_p7 = por %p641_p6, %p640_p5 }
  0x58   :  { %496 = vmatprep.subr.bf16.mxu0 %v675_v1 }
  0x59   :  { %479 = vmatpush3.bf16.msra.mxu1 %v532_v9  ;;  %p643_p8 = pnand %p642_p7, %p636_p4 }
  0x5a   :  { %480 = vmatprep.subr.bf16.mxu1 %v675_v1 }
  0x5b   :  { %497 = vmatpush3.bf16.msra.mxu0 %v539_v16 }
  0x5c   :  { %498 = vmatprep.subr.bf16.mxu0 %v675_v1 }
  0x5d   :  { %481 = vmatpush3.bf16.msra.mxu1 %v533_v10 }
  0x5e   :  { %482 = vmatprep.subr.bf16.mxu1 %v675_v1 }
  0x5f   :  { %499 = vmatpush3.bf16.msra.mxu0 %v540_v17 }
  0x60   :  { %500 = vmatprep.subr.bf16.mxu0 %v675_v1 }
  0x61   :  { %483 = vmatpush3.bf16.msra.mxu1 %v534_v11 }
  0x62   :  { %484 = vmatprep.subr.bf16.mxu1 %v675_v1 }
  0x63   :  { %501 = vmatpush3.bf16.msra.mxu0 %v541_v18 }
  0x64   :  { %502 = vmatprep.subr.bf16.mxu0 %v675_v1 }
  0x65   :  { %485 = vmatpush3.bf16.msra.mxu1 %v535_v12 }
  0x66   :  { %486 = vmatprep.subr.bf16.mxu1 %v675_v1 }
  0x67   :  { %503 = vmatpush3.bf16.msra.mxu0 %v542_v19 }
  0x68   :  { %504 = vmatprep.subr.bf16.mxu0 %v675_v1 }
  0x69   :  { %487 = vmatpush3.bf16.msra.mxu1 %v536_v13 }
  0x6b   :  { %505 = vmatpush3.bf16.msra.mxu0 %v543_v26 }
  0x6c   :  { %506 = vmatprep.subr.bf16.mxu0 %v675_v1 }
  0x6f   :  { %507 = vmatpush3.bf16.msra.mxu0 %v544_v27 }
 0x124   :  { %v165_v21 = vpop.f32.mrb[0].mxu0 }
 0x125   :  { %v166_v22 = vadd.f32 %v423_v20, %v165_v21  ;;  %v471_v23 = vpop.f32.mrb[1].mxu0 }
 0x127   :  { %v169_v24 = vmax.f32 %v166_v22, 0.0 }
 0x129   :  { %v170_v25 = vpack.c.bf16 %v169_v24, %v169_v24 }
 0x12b   :  { %489 = vmatmul.mubr.bf16.vlgmr.msra.gmra.mrb[0].mxu1 %v170_v25 }
 0x1fe   :  { %v276_v29 = vpop.f32.mrb[0].mxu1 }
 0x1ff   :  { %v277_v30 = vadd.f32 %v426_v28, %v276_v29  ;;  %v490_v31 = vpop.f32.mrb[1].mxu1 }
 0x200   :  { %v279_v32 = vpop.f32.mrb[2].mxu1 }
 0x201   :  { %v282_v33 = vmax.f32 %v277_v30, 0.0  ;;  %v491_v34 = vpop.f32.mrb[3].mxu1 }
 0x203   :  { %v283_v35 = vpack.c.bf16 %v282_v33, %v282_v33 }
 0x205   :  { %509 = vmatmul.mubr.bf16.vlgmr.msra.gmra.mrb[4].mxu0 %v283_v35 }
 0x2d8   :  { %v389_v37 = vpop.f32.mrb[4].mxu0 }
 0x2d9   :  { %v390_v38 = vadd.f32 %v435_v36, %v389_v37  ;;  %v510_v39 = vpop.f32.mrb[5].mxu0 }
 0x2da   :  { %v392_v40 = vpop.f32.mrb[6].mxu0 }
 0x2db   :  { %v400_v42 = vmul.f32 1.442695, %v390_v38  ;;  %v511_v43 = vpop.f32.mrb[7].mxu0 }
 0x2dd   :  { %545 = vpow2.f32 %v400_v42 }
 0x2e7   :  { %v546_v45 = vpop.eup %545 }
 0x2e8   :  { %v404_v46 = vsel %vm399_vm7, %v546_v45, %v390_v38 }
 0x2e9   :  { %405 = vst [vmem:[#allocation10] sm:$0xff] %v404_v46 }
 0x2ea   :  { %646 = shalt.err (!%p643_p8)
}
 0x2eb   :  { %s647_s10 = scalar_lea.hbm %s816_s7, 128 }
 0x2ec   :  { %p648_p9 = scmp.ne.s32.totalorder %s816_s7, %s647_s10  ;;  %p651_p10 = scmp.lt.u32.totalorder %s647_s10, %s816_s7 }
 0x2ee   :  { %p653_p11 = pnand %p651_p10, %p648_p9 }
 0x2f0   :  { %656 = shalt.err (!%p653_p11)
}
 0x2f1   :  { %415 = dma.vmem_to_hbm [thread:$0]  %s413_s30, 128, %s816_s7, [#allocation4]  }
 0x2f2   :  { %663 = dma.done.wait [#allocation4], 128  }
 0x2f3   :  { %664 = vsyncadd [#allocation4], 4294967168 }
 0x2f4   :  { %419 = vsyncpa [#allocation3], 1 }
 0x2f5   :  { %420 = vsyncpa [#allocation6], 1 }
 0x2f6   :  { %421 = vsyncpa [#allocation9], 1 }
 0x2f7   :  { %422 = vsyncpa [#allocation4], 1 }

</bundles_post_ra>
